<compile_context>
chip_gen: v6e
topology: v6e:2x2x1
jax: 0.10.0
libtpu: 0.0.40
codegen_flags: <defaults>
</compile_context>

<pallas_src>
import jax
import jax.numpy as jnp
from jax.experimental import pallas as pl
from jax.experimental.pallas import tpu as pltpu


class BaseLoss:
    """Faithful mirror of the PyTorch abstract base class."""

    def __init__(self, config=None):
        self.config = config
        # TODO(synk): original pulls a logger from a global `registry`; no
        # equivalent here, keep a plain attribute.
        self.logger = None

    def forward(self, x, target):
        raise NotImplementedError

    def __call__(self, x, target):
        return self.forward(x, target)


# ----------------------------------------------------------------------------
# Pallas scaffold kernel: the reduction hot-path a concrete subclass would use.
# Computes sum((x - target)^2) over the whole tensor (a representative
# elementwise-loss + global-reduction pattern).
# ----------------------------------------------------------------------------

_LANE = 128
_MAX_BLOCK_ROWS = 4096  # 4096 x 128 f32 = 2 MiB per input block


def _min_block_rows(dtype) -> int:
    """Packed-dtype minimum sublane tile: f32->8, bf16->16, int8/fp8->32."""
    itemsize = jnp.dtype(dtype).itemsize
    return 8 * max(1, 4 // itemsize)


def _round_up(n: int, m: int) -> int:
    return ((n + m - 1) // m) * m


def _loss_reduce_kernel(x_ref, t_ref, out_ref, acc_ref):
    # Grid: (chunk i [parallel], step k within chunk [arbitrary/reduction]).
    k = pl.program_id(1)

    @pl.when(k == 0)
    def _init():
        acc_ref[...] = jnp.zeros_like(acc_ref)

    d = x_ref[...].astype(jnp.float32) - t_ref[...].astype(jnp.float32)
    # TODO(synk): subclasses would replace `d * d` with their own per-element
    # loss term; the abstract BaseLoss defines none.
    term = d * d
    # Fold the (BLOCK_ROWS, 128) block into the persistent (8, 128) accumulator.
    acc_ref[...] += jnp.sum(term.reshape(-1, 8, _LANE), axis=0)

    @pl.when(k == pl.num_programs(1) - 1)
    def _finalize():
        # Lane-dense (1, 128) partial sum per chunk; final reduce in the wrapper.
        out_ref[...] = jnp.sum(acc_ref[...], axis=0, keepdims=True)


@jax.jit
def pallas_loss_scaffold(x, target):
    """sum((x - target)**2) computed in a Pallas TPU kernel.

    x, target: same shape.  Arbitrary sizes are handled via zero-padding
    (zero-padded elements contribute 0 to the sum).  Returns a scalar float32.
    """
    assert x.shape == target.shape
    total = x.size

    min_rows = max(_min_block_rows(x.dtype), _min_block_rows(target.dtype))

    # Rows of 128 lanes, padded up to the minimum sublane tile.
    rows_raw = _round_up(total, _LANE) // _LANE
    rows_raw = max(rows_raw, min_rows)

    # Largest block (multiple of min_rows, <= _MAX_BLOCK_ROWS) that covers the
    # data; then pad rows to a whole number of blocks.
    if rows_raw >= _MAX_BLOCK_ROWS:
        block_rows = _MAX_BLOCK_ROWS
    else:
        block_rows = _round_up(rows_raw, min_rows)
    rows = _round_up(rows_raw, block_rows)
    total_steps = rows // block_rows

    # Outer parallel axis: lets both v7x TensorCores stream HBM concurrently.
    num_chunks = 2 if (total_steps >= 2 and total_steps % 2 == 0) else 1
    steps_per_chunk = total_steps // num_chunks

    padded = rows * _LANE
    xf = x.reshape(-1)
    tf = target.reshape(-1)
    if padded != total:
        pad = padded - total
        xf = jnp.pad(xf, (0, pad))
        tf = jnp.pad(tf, (0, pad))
    x2 = xf.reshape(rows, _LANE)
    t2 = tf.reshape(rows, _LANE)

    def in_index_map(i, k):
        return (i * steps_per_chunk + k, 0)

    cost = pl.CostEstimate(
        flops=3 * padded,
        transcendentals=0,
        bytes_accessed=x2.nbytes + t2.nbytes + num_chunks * _LANE * 4,
    )

    partials = pl.pallas_call(
        _loss_reduce_kernel,
        out_shape=jax.ShapeDtypeStruct((num_chunks, _LANE), jnp.float32),
        grid_spec=pltpu.PrefetchScalarGridSpec(
            num_scalar_prefetch=0,
            grid=(num_chunks, steps_per_chunk),
            in_specs=[
                pl.BlockSpec((block_rows, _LANE), in_index_map),
                pl.BlockSpec((block_rows, _LANE), in_index_map),
            ],
            out_specs=pl.BlockSpec((1, _LANE), lambda i, k: (i, 0)),
            scratch_shapes=[pltpu.VMEM((8, _LANE), jnp.float32)],
        ),
        compiler_params=pltpu.CompilerParams(
            dimension_semantics=("parallel", "arbitrary"),
        ),
        cost_estimate=cost,
    )(x2, t2)

    # Final cross-lane / cross-chunk reduce is tiny; do it in plain JAX.
    return jnp.sum(partials)


if __name__ == "__main__":
    key = jax.random.PRNGKey(0)
    kx, kt = jax.random.split(key)

    # Small NCHW-style shapes consistent with a loss on conv feature maps.
    x = jax.random.normal(kx, (2, 4, 16, 16), dtype=jnp.float32)
    target = jax.random.normal(kt, (2, 4, 16, 16), dtype=jnp.float32)

    # 1) Abstract-base semantics: forward must raise NotImplementedError.
    base = BaseLoss(config={"name": "base"})
    raised = False
    try:
        base(x, target)
    except NotImplementedError:
        raised = True
    assert raised, "BaseLoss.forward must raise NotImplementedError"

    # 2) Run the Pallas reduction scaffold and verify vs pure-JAX ref
    #    (small single-step case).
    out = pallas_loss_scaffold(x, target)
    jax.block_until_ready(out)
    ref = jnp.sum((x - target).astype(jnp.float32) ** 2)
    assert jnp.allclose(out, ref, rtol=1e-5, atol=1e-5), (out, ref)

    # 3) Non-aligned shape exercising the zero-padding path.
    kx1, kt1 = jax.random.split(kt)
    xs = jax.random.normal(kx1, (2, 3, 5, 7), dtype=jnp.float32)
    ts = jax.random.normal(kt1, (2, 3, 5, 7), dtype=jnp.float32)
    out_s = pallas_loss_scaffold(xs, ts)
    jax.block_until_ready(out_s)
    ref_s = jnp.sum((xs - ts).astype(jnp.float32) ** 2)
    assert jnp.allclose(out_s, ref_s, rtol=1e-5, atol=1e-5), (out_s, ref_s)

    # 4) Larger case exercising the multi-step, multi-chunk (2D grid) path.
    kx2, kt2 = jax.random.split(kt1)
    xl = jax.random.normal(kx2, (4, 8, 64, 128), dtype=jnp.float32)
    tl = jax.random.normal(kt2, (4, 8, 64, 128), dtype=jnp.float32)
    out_l = pallas_loss_scaffold(xl, tl)
    jax.block_until_ready(out_l)
    ref_l = jnp.sum((xl - tl).astype(jnp.float32) ** 2)
    assert jnp.allclose(out_l, ref_l, rtol=1e-4, atol=1e-3), (out_l, ref_l)

    print("KERNEL_OK")
</pallas_src>

<mosaic_0001>
module attributes {stable_mosaic.version = 11 : i64} {
  func.func @_loss_reduce_kernel(%arg0: i32, %arg1: i32, %arg2: memref<16x128xf32, #tpu.memory_space<vmem>>, %arg3: memref<16x128xf32, #tpu.memory_space<vmem>>, %arg4: memref<1x128xf32, #tpu.memory_space<vmem>>, %arg5: memref<8x128xf32, #tpu.memory_space<vmem>>) attributes {dimension_semantics = [#tpu.dimension_semantics<parallel>, #tpu.dimension_semantics<arbitrary>], iteration_bounds = array<i64: 1, 1>, scalar_prefetch = 0 : i64, scratch_operands = 1 : i64, tpu.core_type = #tpu.core_type<tc>, window_params = [{transform_indices = @transform_0, window_bounds = array<i64: 16, 128>}, {transform_indices = @transform_1, window_bounds = array<i64: 16, 128>}, {transform_indices = @transform_2, window_bounds = array<i64: 1, 128>}]} {
    %c0_i32 = arith.constant 0 : i32
    %0 = arith.cmpi eq, %arg1, %c0_i32 : i32
    %1 = arith.extui %0 : i1 to i32
    %c0_i32_0 = arith.constant 0 : i32
    %2 = arith.cmpi ne, %1, %c0_i32_0 : i32
    scf.if %2 {
      %cst_10 = arith.constant 0.000000e+00 : f32
      %15 = vector.broadcast %cst_10 : f32 to vector<8x128xf32>
      %c0_11 = arith.constant 0 : index
      %c0_12 = arith.constant 0 : index
      %16 = vector.load %arg5[%c0_11, %c0_12] : memref<8x128xf32, #tpu.memory_space<vmem>>, vector<8x128xf32>
      tpu.vector_store %arg5[%c0_11, %c0_12], %15 {strides = array<i32>} : memref<8x128xf32, #tpu.memory_space<vmem>>, vector<8x128xf32>,
    } else {
    }
    %c0 = arith.constant 0 : index
    %c0_1 = arith.constant 0 : index
    %3 = vector.load %arg2[%c0, %c0_1] : memref<16x128xf32, #tpu.memory_space<vmem>>, vector<16x128xf32>
    %c0_2 = arith.constant 0 : index
    %c0_3 = arith.constant 0 : index
    %4 = vector.load %arg3[%c0_2, %c0_3] : memref<16x128xf32, #tpu.memory_space<vmem>>, vector<16x128xf32>
    %5 = arith.subf %3, %4 : vector<16x128xf32>
    %6 = arith.mulf %5, %5 : vector<16x128xf32>
    %c0_4 = arith.constant 0 : index
    %c0_5 = arith.constant 0 : index
    %7 = vector.load %arg5[%c0_4, %c0_5] : memref<8x128xf32, #tpu.memory_space<vmem>>, vector<8x128xf32>
    %8 = vector.shape_cast %6 : vector<16x128xf32> to vector<2x8x128xf32>
    %cst = arith.constant dense<0.000000e+00> : vector<8x128xf32>
    %9 = vector.multi_reduction <add>, %8, %cst [0] : vector<2x8x128xf32> to vector<8x128xf32>
    %10 = arith.addf %7, %9 : vector<8x128xf32>
    %c0_6 = arith.constant 0 : index
    %c0_7 = arith.constant 0 : index
    %11 = vector.load %arg5[%c0_6, %c0_7] : memref<8x128xf32, #tpu.memory_space<vmem>>, vector<8x128xf32>
    tpu.vector_store %arg5[%c0_6, %c0_7], %10 {strides = array<i32>} : memref<8x128xf32, #tpu.memory_space<vmem>>, vector<8x128xf32>,
    %c0_i32_8 = arith.constant 0 : i32
    %12 = arith.cmpi eq, %arg1, %c0_i32_8 : i32
    %13 = arith.extui %12 : i1 to i32
    %c0_i32_9 = arith.constant 0 : i32
    %14 = arith.cmpi ne, %13, %c0_i32_9 : i32
    scf.if %14 {
      %c0_10 = arith.constant 0 : index
      %c0_11 = arith.constant 0 : index
      %15 = vector.load %arg5[%c0_10, %c0_11] : memref<8x128xf32, #tpu.memory_space<vmem>>, vector<8x128xf32>
      %cst_12 = arith.constant dense<0.000000e+00> : vector<128xf32>
      %16 = vector.multi_reduction <add>, %15, %cst_12 [0] : vector<8x128xf32> to vector<128xf32>
      %17 = vector.shape_cast %16 : vector<128xf32> to vector<1x128xf32>
      %c0_13 = arith.constant 0 : index
      %c0_14 = arith.constant 0 : index
      %18 = vector.load %arg4[%c0_13, %c0_14] : memref<1x128xf32, #tpu.memory_space<vmem>>, vector<1x128xf32>
      tpu.vector_store %arg4[%c0_13, %c0_14], %17 {strides = array<i32>} : memref<1x128xf32, #tpu.memory_space<vmem>>, vector<1x128xf32>,
    } else {
    }
    return
  }
  func.func @transform_0(%arg0: i32, %arg1: i32) -> (i32, i32) {
    %c1_i32 = arith.constant 1 : i32
    %0 = arith.muli %arg0, %c1_i32 : i32
    %1 = arith.addi %0, %arg1 : i32
    %c0_i32 = arith.constant 0 : i32
    %c0_i32_0 = arith.constant 0 : i32
    return %1, %c0_i32 : i32, i32
  }
  func.func @transform_1(%arg0: i32, %arg1: i32) -> (i32, i32) {
    %c1_i32 = arith.constant 1 : i32
    %0 = arith.muli %arg0, %c1_i32 : i32
    %1 = arith.addi %0, %arg1 : i32
    %c0_i32 = arith.constant 0 : i32
    %c0_i32_0 = arith.constant 0 : i32
    return %1, %c0_i32 : i32, i32
  }
  func.func @transform_2(%arg0: i32, %arg1: i32) -> (i32, i32) {
    %c0_i32 = arith.constant 0 : i32
    %c0_i32_0 = arith.constant 0 : i32
    return %arg0, %c0_i32 : i32, i32
  }
}

</mosaic_0001>

<bundles_post_ra>
// kernel: pallas_loss_scaffold.1
= control target key start
LH: loop header
LB: loop body
LE: loop exit
PB: predicated region body
PF: predicated region fallthrough
CT: control target
= control target key end

     0   :  { %s129_s0 = inlined_call_operand.vmem [shape: f32[16,128], index: 0, kind: input, shape index: {}]   ;;  %s130_s1 = inlined_call_operand.vmem [shape: f32[16,128], index: 1, kind: input, shape index: {}]   ;;  %s131_s2 = inlined_call_operand.vmem [shape: f32[1,128], index: 2, kind: output, shape index: {}]  }
   0x1   :  { %v60_v0 = vld [vmem:[%s129_s0] sm:$0xff]  ;;  %v61_v1 = vld [vmem:[%s129_s0 + $0x8] sm:$0xff] }
   0x2   :  { %v62_v2 = vld [vmem:[%s130_s1] sm:$0xff]  ;;  %v63_v3 = vld [vmem:[%s130_s1 + $0x8] sm:$0xff] }
   0x3   :  { %v64_v4 = vsub.f32 %v60_v0, %v62_v2  ;;  %v65_v5 = vsub.f32 %v61_v1, %v63_v3 }
   0x5   :  { %v66_v6 = vmul.f32 %v64_v4, %v64_v4  ;;  %v67_v7 = vmul.f32 %v65_v5, %v65_v5 }
   0x7   :  { %v69_v8 = vadd.f32 %v67_v7, %v66_v6 }
   0x9   :  { %v76_v9 = vrot.slane %v69_v8, 4 }
   0xb   :  { %v77_v10 = vadd.f32 %v76_v9, %v69_v8 }
   0xd   :  { %v78_v11 = vrot.slane %v77_v10, 2 }
   0xf   :  { %v79_v12 = vadd.f32 %v78_v11, %v77_v10 }
  0x11   :  { %v80_v13 = vrot.slane %v79_v12, 1 }
  0x13   :  { %v81_v14 = vadd.f32 %v80_v13, %v79_v12 }
  0x15   :  { %82 = vst [vmem:[%s131_s2] sm:$0x1] %v81_v14 }

</bundles_post_ra>
